<compile_context>
chip_gen: v6e
topology: v6e:2x2x1
jax: 0.10.0
libtpu: 0.0.40
codegen_flags: <defaults>
</compile_context>

<pallas_src>
import jax
import jax.numpy as jnp
from jax.experimental import pallas as pl
from jax.experimental.pallas import tpu as pltpu

_EPS = 1e-12  # torch.nn.functional.normalize default eps


# --------------------------------------------------------------------------
# Kernels
# --------------------------------------------------------------------------
def _l2_norm_lane_kernel(x_ref, o_ref):
    """Normalize each row of a [rows, feat] tile (reduce over lane axis)."""
    x = x_ref[...].astype(jnp.float32)
    ss = jnp.sum(x * x, axis=-1, keepdims=True)          # XLU lane reduction
    inv = 1.0 / jnp.maximum(jnp.sqrt(ss), _EPS)          # per-row scalar
    o_ref[...] = (x * inv).astype(o_ref.dtype)           # VPU scale


def _l2_norm_dim1_kernel(x_ref, o_ref):
    """Normalize over axis=1 of a [1, C, L_tile] tile (sublane reduction)."""
    x = x_ref[...].astype(jnp.float32)
    ss = jnp.sum(x * x, axis=1, keepdims=True)            # reduce over C
    inv = 1.0 / jnp.maximum(jnp.sqrt(ss), _EPS)
    o_ref[...] = (x * inv).astype(o_ref.dtype)


# --------------------------------------------------------------------------
# Wrappers
# --------------------------------------------------------------------------
def _row_tile(m, n, itemsize):
    """Pick a row tile: multiple of 8, bounded by a ~4 MiB VMEM buffer."""
    max_rows_by_vmem = max(8, (4 << 20) // max(1, n * itemsize))
    tm = min(m, 1024, max_rows_by_vmem)
    if tm < m:
        tm = max(8, (tm // 8) * 8)
    return tm


def _normalize_last_axis(x2d):
    """L2-normalize each row of [rows, feat] (dim=1 == last axis for 2-D)."""
    m, n = x2d.shape
    itemsize = jnp.dtype(x2d.dtype).itemsize
    tm = _row_tile(m, n, itemsize)
    return pl.pallas_call(
        _l2_norm_lane_kernel,
        out_shape=jax.ShapeDtypeStruct((m, n), x2d.dtype),
        grid=(pl.cdiv(m, tm),),
        in_specs=[pl.BlockSpec((tm, n), lambda i: (i, 0))],
        out_specs=pl.BlockSpec((tm, n), lambda i: (i, 0)),
        compiler_params=pltpu.CompilerParams(
            dimension_semantics=("parallel",),
        ),
        cost_estimate=pl.CostEstimate(
            flops=3 * m * n,
            transcendentals=2 * m,
            bytes_accessed=2 * m * n * itemsize,
        ),
    )(x2d)


def _normalize_dim1_3d(x3d):
    """L2-normalize over axis=1 of [N, C, L] without transposing the data."""
    b, c, l = x3d.shape
    itemsize = jnp.dtype(x3d.dtype).itemsize

    # Lane tile over the flattened spatial axis: multiple of 128 (unmasked
    # stores) when possible, otherwise the full extent; capped so one f32
    # compute buffer of shape (C, tl) stays ~<= 4 MiB.
    if l % 128 == 0:
        tl_cap = max(128, ((4 << 20) // max(1, c * 4)) // 128 * 128)
        tl = min(l, 2048, tl_cap)
    else:
        tl = l

    return pl.pallas_call(
        _l2_norm_dim1_kernel,
        out_shape=jax.ShapeDtypeStruct((b, c, l), x3d.dtype),
        grid=(b, pl.cdiv(l, tl)),
        in_specs=[pl.BlockSpec((1, c, tl), lambda i, j: (i, 0, j))],
        out_specs=pl.BlockSpec((1, c, tl), lambda i, j: (i, 0, j)),
        compiler_params=pltpu.CompilerParams(
            dimension_semantics=("parallel", "parallel"),
        ),
        cost_estimate=pl.CostEstimate(
            flops=3 * b * c * l,
            transcendentals=2 * b * l,
            bytes_accessed=2 * b * c * l * itemsize,
        ),
    )(x3d)


def normalize_feature(x):
    """Equivalent of PyTorch NormalizeFeature.forward: F.normalize(x, dim=1)."""
    if x.ndim == 2:
        return _normalize_last_axis(x)
    # N-D (e.g. NCHW): view as [N, C, prod(rest)] -- contiguous reshape, no
    # data movement -- and reduce over the channel axis inside the kernel.
    lead, chan = x.shape[0], x.shape[1]
    spatial = 1
    for d in x.shape[2:]:
        spatial *= d
    out3 = _normalize_dim1_3d(x.reshape(lead, chan, spatial))
    return out3.reshape(x.shape)


# --------------------------------------------------------------------------
# Reference + self-test
# --------------------------------------------------------------------------
def _reference(x):
    norm = jnp.sqrt(jnp.sum(jnp.square(x), axis=1, keepdims=True))
    return x / jnp.maximum(norm, _EPS)


if __name__ == "__main__":
    key = jax.random.PRNGKey(0)
    k2d, k2b, k4d = jax.random.split(key, 3)

    # Projection-head case: [batch, feature_dim], lane-dense feature dim.
    x = jax.random.normal(k2d, (8, 128), dtype=jnp.float32)
    out = jax.block_until_ready(normalize_feature(x))
    assert out.shape == x.shape
    assert jnp.allclose(out, _reference(x), atol=1e-6, rtol=1e-5)

    # Non-128-multiple feature width (full-extent lane block path).
    xb = jax.random.normal(k2b, (6, 96), dtype=jnp.float32)
    outb = jax.block_until_ready(normalize_feature(xb))
    assert jnp.allclose(outb, _reference(xb), atol=1e-6, rtol=1e-5)

    # Channel normalization on a 4-D tensor (dim=1), no transpose needed.
    x4 = jax.random.normal(k4d, (2, 4, 16, 16), dtype=jnp.float32)
    out4 = jax.block_until_ready(normalize_feature(x4))
    assert out4.shape == x4.shape
    assert jnp.allclose(out4, _reference(x4), atol=1e-6, rtol=1e-5)

    print("KERNEL_OK")
</pallas_src>

<mosaic_0001>
module attributes {stable_mosaic.version = 11 : i64} {
  func.func @_l2_norm_lane_kernel(%arg0: i32, %arg1: memref<8x128xf32, #tpu.memory_space<vmem>>, %arg2: memref<8x128xf32, #tpu.memory_space<vmem>>) attributes {dimension_semantics = [#tpu.dimension_semantics<parallel>], iteration_bounds = array<i64: 1>, scalar_prefetch = 0 : i64, scratch_operands = 0 : i64, tpu.core_type = #tpu.core_type<tc>, window_params = [{transform_indices = @transform_0, window_bounds = array<i64: 8, 128>}, {transform_indices = @transform_1, window_bounds = array<i64: 8, 128>}]} {
    %c0 = arith.constant 0 : index
    %c0_0 = arith.constant 0 : index
    %0 = vector.load %arg1[%c0, %c0_0] : memref<8x128xf32, #tpu.memory_space<vmem>>, vector<8x128xf32>
    %1 = arith.mulf %0, %0 : vector<8x128xf32>
    %cst = arith.constant dense<0.000000e+00> : vector<8xf32>
    %2 = vector.multi_reduction <add>, %1, %cst [1] : vector<8x128xf32> to vector<8xf32>
    %3 = vector.shape_cast %2 : vector<8xf32> to vector<8x1xf32>
    %4 = math.sqrt %3 : vector<8x1xf32>
    %cst_1 = arith.constant 9.99999996E-13 : f32
    %5 = vector.broadcast %cst_1 : f32 to vector<8x1xf32>
    %6 = arith.maximumf %4, %5 : vector<8x1xf32>
    %cst_2 = arith.constant 1.000000e+00 : f32
    %7 = vector.broadcast %cst_2 : f32 to vector<8x1xf32>
    %8 = arith.divf %7, %6 : vector<8x1xf32>
    %9 = vector.broadcast %8 : vector<8x1xf32> to vector<8x128xf32>
    %10 = arith.mulf %0, %9 : vector<8x128xf32>
    %c0_3 = arith.constant 0 : index
    %c0_4 = arith.constant 0 : index
    %11 = vector.load %arg2[%c0_3, %c0_4] : memref<8x128xf32, #tpu.memory_space<vmem>>, vector<8x128xf32>
    tpu.vector_store %arg2[%c0_3, %c0_4], %10 {strides = array<i32>} : memref<8x128xf32, #tpu.memory_space<vmem>>, vector<8x128xf32>,
    return
  }
  func.func @transform_0(%arg0: i32) -> (i32, i32) {
    %c0_i32 = arith.constant 0 : i32
    %c0_i32_0 = arith.constant 0 : i32
    return %arg0, %c0_i32 : i32, i32
  }
  func.func @transform_1(%arg0: i32) -> (i32, i32) {
    %c0_i32 = arith.constant 0 : i32
    %c0_i32_0 = arith.constant 0 : i32
    return %arg0, %c0_i32 : i32, i32
  }
}

</mosaic_0001>

<bundles_post_ra>
// kernel: tpu_custom_call.1
= control target key start
LH: loop header
LB: loop body
LE: loop exit
PB: predicated region body
PF: predicated region fallthrough
CT: control target
= control target key end

     0   :  { %6 = vsyncpa [#allocation3], 0  ;;  %s120_s0 = inlined_call_operand.hbm [shape: f32[8,128], index: 0, kind: input, shape index: {}]   ;;  %s121_s1 = inlined_call_operand.hbm [shape: f32[8,128], index: 1, kind: output, shape index: {}]  }
   0x1   :  { %7 = vsyncpa [#allocation4], 0  ;;  %s102_s6 = smov [#allocation2]  }
   0x2   :  { %s14_s7 = sshll.u32 %s102_s6, 4  ;;  %s15_s7 = int_to_ptr.vmem [resolvable:$true] %s14_s7 }
   0x3   :  { %s66_s8 = scalar_lea.vmem %s15_s7, 128  ;;  %p71_p1 = scmp.lt.s32.totalorder %s15_s7, %s15_s7 }
   0x4   :  { %p67_p0 = scmp.ne.s32.totalorder %s15_s7, %s66_s8  ;;  %p72_p2 = scmp.lt.s32.totalorder %s66_s8, %s66_s8 }
   0x6   :  { %p73_p3 = por %p72_p2, %p71_p1 }
   0x8   :  { %p74_p4 = pnand %p73_p3, %p67_p0 }
   0xa   :  { %77 = shalt.err (!%p74_p4)
}
   0xb   :  { %17 = dma.hbm_to_vmem [thread:$0]  %s120_s0, 128, %s15_s7, [#allocation3]  }
   0xc   :  { %98 = dma.done.wait [#allocation3], 128  }
   0xd   :  { %99 = vsyncadd [#allocation3], 4294967168  ;;  %v21_v0 = vld [vmem:[#allocation2] sm:$0xff]  ;;  %s103_s11 = smov [#allocation5]  }
   0xe   :  { %v22_v1 = vmul.f32 %v21_v0, %v21_v0  ;;  %s43_s12 = sshll.u32 %s103_s11, 4  ;;  %s44_s12 = int_to_ptr.vmem [resolvable:$true] %s43_s12 }
   0xf   :  { %s78_s0 = scalar_lea.vmem %s44_s12, 128  ;;  %p83_p6 = scmp.lt.s32.totalorder %s44_s12, %s44_s12 }
  0x10   :  { %23 = vadd.xlane.f32.xlu0 %v22_v1  ;;  %p79_p5 = scmp.ne.s32.totalorder %s44_s12, %s78_s0  ;;  %p84_p7 = scmp.lt.s32.totalorder %s78_s0, %s78_s0 }
  0x12   :  { %p85_p8 = por %p84_p7, %p83_p6 }
  0x14   :  { %p86_p9 = pnand %p85_p8, %p79_p5 }
  0x99   :  { %v24_v2 = vpop.xlane.xlu0 %23 }
  0x9a   :  { %54 = vrsqrt.f32 %v24_v2  ;;  %vm27_vm0 = vcmp.eq.f32.partialorder %v24_v2, inf  ;;  %v30_v5 = vand.u32 2147483648, %v24_v2  ;;  %vm29_vm1 = vcmp.eq.f32.partialorder %v24_v2, 0.0 }
  0xa7   :  { %v55_v3 = vpop.eup %54 }
  0xa8   :  { %v26_v4 = vmul.f32 %v55_v3, %v24_v2 }
  0xaa   :  { %v28_v6 = vsel %vm27_vm0, %v24_v2, %v26_v4 }
  0xab   :  { %v31_v7 = vsel %vm29_vm1, %v30_v5, %v28_v6 }
  0xac   :  { %v32_v8 = vmax.f32 %v31_v7, 1e-12 }
  0xae   :  { %56 = vrcp.f32 %v32_v8 }
  0xbb   :  { %v57_v9 = vpop.eup %56 }
  0xbc   :  { %v35_v10 = vmul.f32 %v57_v9, %v21_v0 }
  0xbe   :  { %36 = vst [vmem:[#allocation5] sm:$0xff] %v35_v10 }
  0xbf   :  { %89 = shalt.err (!%p86_p9)
}
  0xc0   :  { %46 = dma.vmem_to_hbm [thread:$0]  %s44_s12, 128, %s121_s1, [#allocation4]  }
  0xc1   :  { %100 = dma.done.wait [#allocation4], 128  }
  0xc2   :  { %101 = vsyncadd [#allocation4], 4294967168 }
  0xc3   :  { %50 = vsyncpa [#allocation3], 1 }
  0xc4   :  { %51 = vsyncpa [#allocation4], 1 }

</bundles_post_ra>
